<compile_context>
chip_gen: v6e
topology: v6e:2x2x1
jax: 0.10.0
libtpu: 0.0.40
codegen_flags: <defaults>
</compile_context>

<pallas_src>
import jax
import jax.numpy as jnp
from jax.experimental import pallas as pl
from jax.experimental.pallas import tpu as pltpu

_BLOCK_BYTES = 4 * 1024 * 1024      # ~4 MiB per input block (review: 4-8 MiB for v7x)
_VMEM_LIMIT = 48 * 1024 * 1024      # fits 2x(in+out) blocks + scratch on v5e/v6e/v7x


def _optim_activation_kernel(w_ref, x_ref, o_ref):
    # w_ref: (5,) softmax'd params in SMEM (cheap scalar reads, hoisted first)
    # x_ref, o_ref: (tile_r, lanes) tiles in VMEM (caller dtype)
    w0 = w_ref[0]
    w1 = w_ref[1]
    w2 = w_ref[2]
    x = x_ref[...].astype(jnp.float32)
    sig = jax.nn.sigmoid(x)                      # EUP logistic path
    # x*(w0*sig + w2) + w1*sin(x)  ==  sigmoid(x)*x*w0 + sin(x)*w1 + x*w2
    o_ref[...] = (x * (w0 * sig + w2) + w1 * jnp.sin(x)).astype(o_ref.dtype)


def _choose_lanes(total: int):
    """Largest lane-dense width (multiple of 128) that divides total exactly."""
    for cand in (512, 256, 128):
        if total % cand == 0:
            return cand
    return None


def optim_activation(x_nchw: jax.Array, params: jax.Array) -> jax.Array:
    """x_nchw: (N, C, H, W); params: (5,) raw (pre-softmax) parameters."""
    N, C, H, W = x_nchw.shape
    x_dtype = x_nchw.dtype
    # Glue: softmax over the tiny 5-element parameter vector (not the hot path).
    w = jax.nn.softmax(params.astype(jnp.float32), axis=-1)

    total = N * C * H * W
    lanes = _choose_lanes(total)
    if lanes is None:
        # TODO(synk): mask the ragged tail in-kernel (SMEM valid-count scalar)
        # instead of pad+crop; only hit when total is not a multiple of 128.
        lanes = 512
        padded_total = pl.cdiv(total, lanes) * lanes
    else:
        padded_total = total

    x_flat = x_nchw.reshape(-1)
    if padded_total != total:
        x_flat = jnp.pad(x_flat, (0, padded_total - total))
    rows = padded_total // lanes
    x2d = x_flat.reshape(rows, lanes)            # pure bitcast when no pad

    itemsize = jnp.dtype(x_dtype).itemsize
    # ~4 MiB blocks; block_rows is a multiple of 8 (and 16) for any lane width.
    block_rows = max(8, _BLOCK_BYTES // (lanes * itemsize))
    tile_r = rows if rows <= block_rows else block_rows   # full-extent if small
    grid = (pl.cdiv(rows, tile_r),)

    out2d = pl.pallas_call(
        _optim_activation_kernel,
        out_shape=jax.ShapeDtypeStruct((rows, lanes), x_dtype),
        grid=grid,
        in_specs=[
            pl.BlockSpec(memory_space=pltpu.SMEM),            # w: (5,) scalars
            pl.BlockSpec((tile_r, lanes), lambda i: (i, 0)),  # x tile
        ],
        out_specs=pl.BlockSpec((tile_r, lanes), lambda i: (i, 0)),
        compiler_params=pltpu.CompilerParams(
            dimension_semantics=("parallel",),
            vmem_limit_bytes=_VMEM_LIMIT,
        ),
        cost_estimate=pl.CostEstimate(
            flops=6 * padded_total,
            transcendentals=2 * padded_total,          # sigmoid + sin
            bytes_accessed=2 * padded_total * itemsize,
        ),
    )(w, x2d)

    out_flat = out2d.reshape(-1)
    if padded_total != total:
        out_flat = out_flat[:total]
    return out_flat.reshape(N, C, H, W)


if __name__ == "__main__":
    key = jax.random.PRNGKey(0)
    N, C, H, W = 2, 4, 16, 16
    x = jax.random.normal(key, (N, C, H, W), dtype=jnp.float32)

    # Deterministic parameter init matching nn.Parameter(torch.zeros(5)).
    params = jnp.zeros((5,), dtype=jnp.float32)

    out = optim_activation(x, params)
    jax.block_until_ready(out)

    # Reference check in plain JAX (same math as the torch forward).
    wref = jax.nn.softmax(params)
    ref = (jax.nn.sigmoid(x) * x * wref[0]
           + jnp.sin(x) * wref[1]
           + x * wref[2])
    assert out.shape == (N, C, H, W)
    assert jnp.allclose(out, ref, atol=1e-5, rtol=1e-5)

    print("KERNEL_OK")
</pallas_src>

<mosaic_0001>
module attributes {stable_mosaic.version = 11 : i64} {
  func.func @_optim_activation_kernel(%arg0: i32, %arg1: memref<5xf32, #tpu.memory_space<smem>>, %arg2: memref<4x512xf32, #tpu.memory_space<vmem>>, %arg3: memref<4x512xf32, #tpu.memory_space<vmem>>) attributes {dimension_semantics = [#tpu.dimension_semantics<parallel>], iteration_bounds = array<i64: 1>, scalar_prefetch = 0 : i64, scratch_operands = 0 : i64, tpu.core_type = #tpu.core_type<tc>, window_params = [{transform_indices = @transform_0, window_bounds = array<i64: 5>}, {transform_indices = @transform_1, window_bounds = array<i64: 4, 512>}, {transform_indices = @transform_2, window_bounds = array<i64: 4, 512>}]} {
    %c0 = arith.constant 0 : index
    %0 = memref.load %arg1[%c0] : memref<5xf32, #tpu.memory_space<smem>>
    %c1 = arith.constant 1 : index
    %1 = memref.load %arg1[%c1] : memref<5xf32, #tpu.memory_space<smem>>
    %c2 = arith.constant 2 : index
    %2 = memref.load %arg1[%c2] : memref<5xf32, #tpu.memory_space<smem>>
    %c0_0 = arith.constant 0 : index
    %c0_1 = arith.constant 0 : index
    %3 = vector.load %arg2[%c0_0, %c0_1] : memref<4x512xf32, #tpu.memory_space<vmem>>, vector<4x512xf32>
    %4 = arith.negf %3 : vector<4x512xf32>
    %5 = math.exp %4 : vector<4x512xf32>
    %cst = arith.constant 1.000000e+00 : f32
    %6 = vector.broadcast %cst : f32 to vector<4x512xf32>
    %7 = arith.addf %6, %5 : vector<4x512xf32>
    %8 = arith.divf %6, %7 : vector<4x512xf32>
    %9 = vector.broadcast %0 : f32 to vector<4x512xf32>
    %10 = arith.mulf %9, %8 : vector<4x512xf32>
    %11 = vector.broadcast %2 : f32 to vector<4x512xf32>
    %12 = arith.addf %10, %11 : vector<4x512xf32>
    %13 = arith.mulf %3, %12 : vector<4x512xf32>
    %14 = math.sin %3 : vector<4x512xf32>
    %15 = vector.broadcast %1 : f32 to vector<4x512xf32>
    %16 = arith.mulf %15, %14 : vector<4x512xf32>
    %17 = arith.addf %13, %16 : vector<4x512xf32>
    %c0_2 = arith.constant 0 : index
    %c0_3 = arith.constant 0 : index
    %18 = vector.load %arg3[%c0_2, %c0_3] : memref<4x512xf32, #tpu.memory_space<vmem>>, vector<4x512xf32>
    tpu.vector_store %arg3[%c0_2, %c0_3], %17 {strides = array<i32>} : memref<4x512xf32, #tpu.memory_space<vmem>>, vector<4x512xf32>,
    return
  }
  func.func @transform_0(%arg0: i32) -> i32 {
    %c0_i32 = arith.constant 0 : i32
    %c0_i32_0 = arith.constant 0 : i32
    return %c0_i32 : i32
  }
  func.func @transform_1(%arg0: i32) -> (i32, i32) {
    %c0_i32 = arith.constant 0 : i32
    %c0_i32_0 = arith.constant 0 : i32
    return %arg0, %c0_i32 : i32, i32
  }
  func.func @transform_2(%arg0: i32) -> (i32, i32) {
    %c0_i32 = arith.constant 0 : i32
    %c0_i32_0 = arith.constant 0 : i32
    return %arg0, %c0_i32 : i32, i32
  }
}

</mosaic_0001>

<bundles_post_ra>
// kernel: tpu_custom_call.1
= control target key start
LH: loop header
LB: loop body
LE: loop exit
PB: predicated region body
PF: predicated region fallthrough
CT: control target
= control target key end

     0   :  { %7 = vsyncpa [#allocation5], 0  ;;  %s523_s0 = inlined_call_operand.hbm [shape: f32[5], index: 0, kind: input, shape index: {}]   ;;  %s524_s1 = inlined_call_operand.hbm [shape: f32[4,512], index: 1, kind: input, shape index: {}]   ;;  %s525_s2 = inlined_call_operand.hbm [shape: f32[4,512], index: 2, kind: output, shape index: {}]  }
   0x1   :  { %8 = vsyncpa [#allocation3], 0 }
   0x2   :  { %9 = vsyncpa [#allocation4], 0  ;;  %s390_s9 = smov [#allocation2]   ;;  %s391_s12 = smov [#allocation6]  }
   0x3   :  { %17 = dma.hbm_to_smem %s523_s0, 16, %s390_s9, [#allocation5]  }
   0x4   :  { %s24_s13 = sshll.u32 %s391_s12, 4  ;;  %s25_s13 = int_to_ptr.vmem [resolvable:$true] %s24_s13 }
   0x5   :  { %s352_s14 = scalar_lea.vmem %s25_s13, 256  ;;  %p357_p1 = scmp.lt.s32.totalorder %s25_s13, %s25_s13 }
   0x6   :  { %p353_p0 = scmp.ne.s32.totalorder %s25_s13, %s352_s14  ;;  %p358_p2 = scmp.lt.s32.totalorder %s352_s14, %s352_s14 }
   0x8   :  { %p359_p3 = por %p358_p2, %p357_p1 }
   0xa   :  { %p360_p4 = pnand %p359_p3, %p353_p0 }
   0xc   :  { %363 = shalt.err (!%p360_p4)
}
   0xd   :  { %27 = dma.hbm_to_vmem [thread:$0]  %s524_s1, 256, %s25_s13, [#allocation3]  }
   0xe   :  { %384 = dma.done.wait [#allocation5], 16  }
   0xf   :  { %385 = vsyncadd [#allocation5], 4294967280 }
  0x10   :  { %386 = dma.done.wait [#allocation3], 256  }
  0x11   :  { %387 = vsyncadd [#allocation3], 4294967040 }
  0x12   :  { %34 = sfence }
  0x13   :  { %v420_v0 = vld [vmem:[#allocation6] sm:$0xff]  ;;  %v423_v2 = vld [vmem:[#allocation6 + $0x8] sm:$0xff]  ;;  %v392_v16 = vmov 683565275   ;;  %v393_v18 = vmov 2475754826  }
  0x14   :  { %v63_v1 = vand.u32 2139095040, %v420_v0  ;;  %v60_v4 = vand.u32 2147483647, %v420_v0  ;;  %v167_v6 = vand.u32 2139095040, %v423_v2  ;;  %v394_v20 = vmov 2131351028  }
  0x15   :  { %v395_v22 = vmov 2102212464   ;;  %v396_v24 = vmov 920167782   ;;  %v164_v26 = vand.u32 2147483647, %v423_v2 }
  0x16   :  { %v64_v3 = vshrl.u32 %v63_v1, 23  ;;  %v67_v8 = vand.u32 8388607, %v60_v4  ;;  %v168_v9 = vshrl.u32 %v167_v6, 23  ;;  %v397_v32 = vmov 1326507024  }
  0x17   :  { %v171_v58 = vand.u32 8388607, %v164_v26  ;;  %vm62_vm13 = vcmp.lt.s32.totalorder %v420_v0, 0  ;;  %vm482_vm14 = vcmp.le.f32.partialorder %v60_v4, 0.7853982  ;;  %s486_s0 = sld [smem:[#allocation2]] }
  0x18   :  { %v295_v5 = vadd.s32 4294967169, %v64_v3  ;;  %v68_v12 = vor.u32 8388608, %v67_v8  ;;  %v299_v14 = vadd.s32 4294967169, %v168_v9  ;;  %s495_s1 = sld [smem:[#allocation2 + $0x2]]  ;;  %s398_s18 = smov [#allocation7]  }
  0x19   :  { %s498_s17 = sld [smem:[#allocation2 + $0x1]]  ;;  %s281_s19 = sshll.u32 %s398_s18, 4  ;;  %s282_s19 = int_to_ptr.vmem [resolvable:$true] %s281_s19 }
  0x1a   :  { %v70_v7 = vadd.s32 1, %v295_v5  ;;  %v108_v34 = vshll.u32 %v68_v12, 8  ;;  %v174_v38 = vadd.s32 1, %v299_v14  ;;  %s364_s20 = scalar_lea.vmem %s282_s19, 256  ;;  %p369_p6 = scmp.lt.s32.totalorder %s282_s19, %s282_s19 }
  0x1b   :  { %p365_p5 = scmp.ne.s32.totalorder %s282_s19, %s364_s20  ;;  %p370_p7 = scmp.lt.s32.totalorder %s364_s20, %s364_s20 }
  0x1c   :  { %vm71_vm0 = vcmp.gt.s32.totalorder %v70_v7, 0  ;;  %vm175_vm5 = vcmp.gt.s32.totalorder %v174_v38, 0 }
  0x1d   :  { %v72_v10 = vsel %vm71_vm0, %v70_v7, 0  ;;  %v176_v53 = vsel %vm175_vm5, %v174_v38, 0  ;;  %v172_v7 = vor.u32 8388608, %v171_v58  ;;  %vm166_vm0 = vcmp.lt.s32.totalorder %v423_v2, 0  ;;  %p371_p8 = por %p370_p7, %p369_p6 }
  0x1e   :  { %v74_v11 = vand.u32 31, %v72_v10  ;;  %v73_v13 = vshrl.u32 %v72_v10, 5  ;;  %v178_v59 = vand.u32 31, %v176_v53  ;;  %v177_v61 = vshrl.u32 %v176_v53, 5 }
  0x1f   :  { %vm152_vm5 = vweird.f32 %v420_v0  ;;  %p372_p9 = pnand %p371_p8, %p365_p5 }
  0x20   :  { %v75_v15 = vsub.s32 32, %v74_v11  ;;  %v77_v17 = vshll.u32 %v392_v16, %v74_v11  ;;  %v80_v19 = vshll.u32 %v393_v18, %v74_v11  ;;  %v83_v21 = vshll.u32 %v394_v20, %v74_v11 }
  0x21   :  { %v86_v23 = vshll.u32 %v395_v22, %v74_v11  ;;  %v89_v25 = vshll.u32 %v396_v24, %v74_v11  ;;  %vm92_vm1 = vcmp.lt.s32.totalorder %v73_v13, 1  ;;  %vm94_vm2 = vcmp.lt.s32.totalorder %v73_v13, 3 }
  0x22   :  { %v76_v27 = vshrl.u32 %v392_v16, %v75_v15  ;;  %v78_v28 = vshrl.u32 %v393_v18, %v75_v15  ;;  %v81_v29 = vshrl.u32 %v394_v20, %v75_v15  ;;  %v84_v30 = vshrl.u32 %v395_v22, %v75_v15 }
  0x23   :  { %v87_v31 = vshrl.u32 %v396_v24, %v75_v15  ;;  %v90_v33 = vshrl.u32 %v397_v32, %v75_v15  ;;  %vm95_vm3 = vcmp.lt.s32.totalorder %v73_v13, 4  ;;  %vm93_vm4 = vcmp.lt.s32.totalorder %v73_v13, 2 }
  0x24   :  { %v79_v35 = vor.u32 %v78_v28, %v77_v17  ;;  %v82_v36 = vor.u32 %v81_v29, %v80_v19  ;;  %v85_v37 = vor.u32 %v84_v30, %v83_v21  ;;  %v179_v62 = vsub.s32 32, %v178_v59 }
  0x25   :  { %v88_v39 = vor.u32 %v87_v31, %v86_v23  ;;  %v91_v40 = vor.u32 %v90_v33, %v89_v25  ;;  %v181_v63 = vshll.u32 %v392_v16, %v178_v59  ;;  %v184_v1 = vshll.u32 %v393_v18, %v178_v59 }
  0x26   :  { %v96_v41 = vsel %vm92_vm1, %v76_v27, %v79_v35  ;;  %v97_v42 = vsel %vm95_vm3, %v85_v37, 2102212464  ;;  %v100_v43 = vsel %vm92_vm1, %v79_v35, %v82_v36  ;;  %v104_v46 = vsel %vm92_vm1, %v82_v36, %v85_v37 }
  0x27   :  { %v98_v44 = vsel %vm94_vm2, %v82_v36, %v97_v42  ;;  %v101_v45 = vsel %vm95_vm3, %v88_v39, 920167782  ;;  %v105_v47 = vsel %vm95_vm3, %v91_v40, 1326507024  ;;  %v187_v5 = vshll.u32 %v394_v20, %v178_v59 }
  0x28   :  { %v102_v48 = vsel %vm94_vm2, %v85_v37, %v101_v45  ;;  %v106_v49 = vsel %vm94_vm2, %v88_v39, %v105_v47  ;;  %v99_v50 = vsel %vm93_vm4, %v96_v41, %v98_v44  ;;  %v190_v6 = vshll.u32 %v395_v22, %v178_v59 }
  0x29   :  { %v103_v51 = vsel %vm93_vm4, %v100_v43, %v102_v48  ;;  %v107_v52 = vsel %vm93_vm4, %v104_v46, %v106_v49  ;;  %v115_v60 = vmul.u32 %v108_v34, %v99_v50  ;;  %v182_v8 = vshrl.u32 %v393_v18, %v179_v62 }
  0x2a   :  { %v435_v54 = vmul.u32.u64.low %v108_v34, %v107_v52  ;;  %v436_v55 = vmul.u32.u64.high %v108_v34, %v107_v52, %v435_v54  ;;  %v438_v56 = vmul.u32.u64.low %v108_v34, %v103_v51  ;;  %v439_v57 = vmul.u32.u64.high %v108_v34, %v103_v51, %v438_v56 }
  0x2b   :  { %v185_v9 = vshrl.u32 %v394_v20, %v179_v62  ;;  %v188_v10 = vshrl.u32 %v395_v22, %v179_v62  ;;  %v191_v12 = vshrl.u32 %v396_v24, %v179_v62  ;;  %v193_v13 = vshll.u32 %v396_v24, %v178_v59 }
  0x2c   :  { %vm117_vm6 = vc.u32 %v436_v55, %v438_v56  ;;  %v118_v3 = vadd.s32 1, %v439_v57  ;;  %v194_v14 = vshrl.u32 %v397_v32, %v179_v62  ;;  %v183_v17 = vor.u32 %v182_v8, %v181_v63 }
  0x2d   :  { %v186_v19 = vor.u32 %v185_v9, %v184_v1  ;;  %v189_v21 = vor.u32 %v188_v10, %v187_v5  ;;  %v192_v23 = vor.u32 %v191_v12, %v190_v6  ;;  %vm196_vm7 = vcmp.lt.s32.totalorder %v177_v61, 1 }
  0x2e   :  { %v119_v11 = vsel %vm117_vm6, %v118_v3, %v439_v57  ;;  %v180_v27 = vshrl.u32 %v392_v16, %v179_v62  ;;  %vm198_vm8 = vcmp.lt.s32.totalorder %v177_v61, 3  ;;  %vm199_vm9 = vcmp.lt.s32.totalorder %v177_v61, 4 }
  0x2f   :  { %v120_v15 = vadd.s32 %v119_v11, %v115_v60  ;;  %v195_v28 = vor.u32 %v194_v14, %v193_v13  ;;  %vm197_vm10 = vcmp.lt.s32.totalorder %v177_v61, 2  ;;  %v204_v18 = vsel %vm196_vm7, %v183_v17, %v186_v19 }
  0x30   :  { %v212_v20 = vshll.u32 %v172_v7, 8  ;;  %v201_v24 = vsel %vm199_vm9, %v189_v21, 2102212464  ;;  %v205_v29 = vsel %vm199_vm9, %v192_v23, 920167782  ;;  %v200_v33 = vsel %vm196_vm7, %v180_v27, %v183_v17 }
  0x31   :  { %v121_v25 = vadd.s32 536870912, %v120_v15  ;;  %v293_v30 = vmul.f32 -1.442695, %v420_v0  ;;  %v206_v31 = vsel %vm198_vm8, %v189_v21, %v205_v29  ;;  %v208_v34 = vsel %vm196_vm7, %v186_v19, %v189_v21 }
  0x32   :  { %v207_v16 = vsel %vm197_vm10, %v204_v18, %v206_v31  ;;  %v202_v35 = vsel %vm198_vm8, %v186_v19, %v201_v24  ;;  %v209_v36 = vsel %vm199_vm9, %v195_v28, 1326507024  ;;  %v116_v53 = vadd.s32 %v438_v56, %v436_v55 }
  0x33   :  { %v451_v22 = vshrl.u32 %v121_v25, 30  ;;  %v460_v37 = vmul.u32.u64.low %v212_v20, %v207_v16  ;;  %v461_v38 = vmul.u32.u64.high %v212_v20, %v207_v16, %v460_v37  ;;  %v210_v40 = vsel %vm198_vm8, %v192_v23, %v209_v36 }
  0x34   :  { %320 = vpow2.f32 %v293_v30  ;;  %v211_v41 = vsel %vm197_vm10, %v208_v34, %v210_v40  ;;  %v203_v43 = vsel %vm197_vm10, %v200_v33, %v202_v35  ;;  %v294_v3 = vmul.f32 -1.442695, %v423_v2 }
  0x35   :  { %v123_v32 = vshll.u32 %v451_v22, 30  ;;  %v466_v44 = vmul.u32.u64.low %v212_v20, %v211_v41  ;;  %v467_v45 = vmul.u32.u64.high %v212_v20, %v211_v41, %v466_v44  ;;  %v222_v47 = vadd.s32 1, %v461_v38 }
  0x36   :  { %v219_v48 = vmul.u32 %v212_v20, %v203_v43  ;;  %322 = vpow2.f32 %v294_v3  ;;  %v146_v14 = vsub.s32 4, %v451_v22  ;;  %v52_v36 = vstv %s486_s0 }
  0x37   :  { %v124_v39 = vsub.s32 %v120_v15, %v123_v32  ;;  %vm221_vm11 = vc.u32 %v467_v45, %v460_v37  ;;  %v220_v28 = vadd.s32 %v460_v37, %v467_v45  ;;  %vm505_vm2 = vcmp.le.f32.partialorder %v164_v26, 0.7853982 }
  0x38   :  { %v223_v51 = vsel %vm221_vm11, %v222_v47, %v461_v38  ;;  %v147_v25 = vsel %vm62_vm13, %v146_v14, %v451_v22  ;;  %vm256_vm9 = vweird.f32 %v423_v2 }
  0x39   :  { %v126_v42 = vsub.s32 0, %v124_v39  ;;  %v224_v52 = vadd.s32 %v223_v51, %v219_v48  ;;  %v149_v29 = vsel %vm482_vm14, 0, %v147_v25 }
  0x3a   :  { %v153_v32 = vadd.s32 3, %v149_v29 }
  0x3b   :  { %v296_v46 = vmin.u32 %v126_v42, %v124_v39  ;;  %v225_v57 = vadd.s32 536870912, %v224_v52  ;;  %v55_v42 = vstv %s495_s1 }
  0x3d   :  { %v128_v49 = vclz %v296_v46  ;;  %v474_v61 = vshrl.u32 %v225_v57, 30 }
  0x3f   :  { %v297_v50 = vadd.s32 4294967294, %v128_v49  ;;  %v227_v5 = vshll.u32 %v474_v61, 30  ;;  %v250_v44 = vsub.s32 4, %v474_v61 }
  0x41   :  { %vm298_vm12 = vcmp.lt.s32.totalorder %v297_v50, 0  ;;  %v321_v62 = vpop.eup %320  ;;  %v228_v8 = vsub.s32 %v224_v52, %v227_v5 }
  0x42   :  { %v131_v54 = vsel %vm298_vm12, 0, %v297_v50  ;;  %v46_v9 = vadd.f32 1.0, %v321_v62 }
  0x43   :  { %v132_v58 = vsub.s32 32, %v131_v54  ;;  %v133_v59 = vshll.u32 %v124_v39, %v131_v54  ;;  %v136_v60 = vsub.s32 4294967266, %v131_v54  ;;  %v230_v10 = vsub.s32 0, %v228_v8  ;;  %v323_v31 = vpop.eup %322 }
  0x44   :  { %324 = vrcp.f32 %v46_v9  ;;  %v47_v35 = vadd.f32 1.0, %v323_v31  ;;  %v154_v39 = vand.u32 3, %v153_v32  ;;  %v251_v54 = vsel %vm166_vm0, %v250_v44, %v474_v61 }
  0x45   :  { %v134_v63 = vshrl.u32 %v116_v53, %v132_v58  ;;  %v137_v1 = vadd.s32 127, %v136_v60  ;;  %v300_v12 = vmin.u32 %v230_v10, %v228_v8  ;;  %v268_v58 = vstv %s498_s17 }
  0x46   :  { %vm159_vm1 = vcmp.eq.s32.totalorder %v154_v39, 2  ;;  %vm156_vm3 = vcmp.eq.s32.totalorder %v154_v39, 0  ;;  %vm155_vm4 = vcmp.lt.s32.totalorder %v154_v39, 2 }
  0x47   :  { %v135_v6 = vor.u32 %v134_v63, %v133_v59  ;;  %v138_v7 = vshll.u32 %v137_v1, 23  ;;  %v232_v15 = vclz %v300_v12  ;;  %v253_v63 = vsel %vm505_vm2, 0, %v251_v54 }
  0x48   :  { %v257_v3 = vadd.s32 3, %v253_v63 }
  0x49   :  { %v139_v55 = vor.u32 4788187, %v138_v7  ;;  %v142_v56 = vcvt.s32.f32 %v135_v6  ;;  %v301_v21 = vadd.s32 4294967294, %v232_v15 }
  0x4a   :  { %v258_v61 = vand.u32 3, %v257_v3 }
  0x4b   :  { %v140_v11 = vand.u32 2147483647, %v139_v55  ;;  %vm302_vm15 = vcmp.lt.s32.totalorder %v301_v21, 0 }
  0x4c   :  { %v235_v4 = vsel %vm302_vm15, 0, %v301_v21  ;;  %vm263_vm6 = vcmp.eq.s32.totalorder %v258_v61, 2  ;;  %vm260_vm7 = vcmp.eq.s32.totalorder %v258_v61, 0  ;;  %vm259_vm8 = vcmp.lt.s32.totalorder %v258_v61, 2 }
  0x4d   :  { %v143_v13 = vmul.f32 %v142_v56, %v140_v11  ;;  %v236_v18 = vsub.s32 32, %v235_v4  ;;  %v237_v20 = vshll.u32 %v228_v8, %v235_v4  ;;  %v240_v24 = vsub.s32 4294967266, %v235_v4 }
  0x4f   :  { %v144_v19 = vxor.u32 2147483648, %v143_v13  ;;  %v238_v22 = vshrl.u32 %v220_v28, %v236_v18  ;;  %v241_v30 = vadd.s32 127, %v240_v24 }
  0x51   :  { %v145_v23 = vsel %vm62_vm13, %v144_v19, %v143_v13  ;;  %v239_v33 = vor.u32 %v238_v22, %v237_v20  ;;  %v242_v16 = vshll.u32 %v241_v30, 23  ;;  %v325_v34 = vpop.eup %324 }
  0x52   :  { %v148_v27 = vsel %vm482_vm14, %v420_v0, %v145_v23  ;;  %v53_v41 = vmul.f32 %v325_v34, %v52_v36 }
  0x53   :  { %326 = vcosq.f32 %v148_v27  ;;  %v243_v37 = vor.u32 4788187, %v242_v16  ;;  %v246_v38 = vcvt.s32.f32 %v239_v33 }
  0x54   :  { %328 = vsinq.f32 %v148_v27  ;;  %v56_v49 = vadd.f32 %v55_v42, %v53_v41 }
  0x55   :  { %v244_v40 = vand.u32 2147483647, %v243_v37  ;;  %330 = vrcp.f32 %v47_v35 }
  0x56   :  { %v58_v59 = vmul.f32 %v56_v49, %v420_v0 }
  0x57   :  { %v247_v43 = vmul.f32 %v246_v38, %v244_v40 }
  0x59   :  { %v248_v47 = vxor.u32 2147483648, %v247_v43 }
  0x5b   :  { %v249_v52 = vsel %vm166_vm0, %v248_v47, %v247_v43 }
  0x5c   :  { %v252_v26 = vsel %vm505_vm2, %v423_v2, %v249_v52 }
  0x5d   :  { %332 = vcosq.f32 %v252_v26 }
  0x5e   :  { %334 = vsinq.f32 %v252_v26 }
  0x60   :  { %v327_v45 = vpop.eup %326 }
  0x61   :  { %v329_v48 = vpop.eup %328  ;;  %v160_v50 = vxor.u32 2147483648, %v327_v45 }
  0x62   :  { %v157_v51 = vxor.u32 2147483648, %v329_v48  ;;  %v331_v6 = vpop.eup %330 }
  0x63   :  { %v161_v53 = vsel %vm159_vm1, %v160_v50, %v329_v48  ;;  %v54_v7 = vmul.f32 %v331_v6, %v52_v36 }
  0x64   :  { %v158_v57 = vsel %vm156_vm3, %v327_v45, %v157_v51 }
  0x65   :  { %v162_v60 = vsel %vm155_vm4, %v158_v57, %v161_v53  ;;  %v57_v55 = vadd.f32 %v55_v42, %v54_v7 }
  0x66   :  { %v163_v62 = vsel %vm152_vm5, nan, %v162_v60 }
  0x67   :  { %v269_v1 = vmul.f32 %v268_v58, %v163_v62  ;;  %v59_v12 = vmul.f32 %v57_v55, %v423_v2 }
  0x69   :  { %v271_v5 = vadd.f32 %v269_v1, %v58_v59 }
  0x6a   :  { %v333_v8 = vpop.eup %332 }
  0x6b   :  { %273 = vst [vmem:[#allocation7] sm:$0xff] %v271_v5  ;;  %v335_v9 = vpop.eup %334  ;;  %v264_v56 = vxor.u32 2147483648, %v333_v8 }
  0x6c   :  { %v261_v0 = vxor.u32 2147483648, %v335_v9 }
  0x6d   :  { %v265_v10 = vsel %vm263_vm6, %v264_v56, %v335_v9 }
  0x6e   :  { %v262_v11 = vsel %vm260_vm7, %v333_v8, %v261_v0 }
  0x6f   :  { %v266_v13 = vsel %vm259_vm8, %v262_v11, %v265_v10 }
  0x70   :  { %v267_v14 = vsel %vm256_vm9, nan, %v266_v13 }
  0x71   :  { %v270_v15 = vmul.f32 %v268_v58, %v267_v14 }
  0x73   :  { %v272_v17 = vadd.f32 %v270_v15, %v59_v12 }
  0x75   :  { %274 = vst [vmem:[#allocation7 + $0x8] sm:$0xff] %v272_v17 }
  0x76   :  { %375 = shalt.err (!%p372_p9)
}
  0x77   :  { %284 = dma.vmem_to_hbm [thread:$0]  %s282_s19, 256, %s525_s2, [#allocation4]  }
  0x78   :  { %388 = dma.done.wait [#allocation4], 256  }
  0x79   :  { %389 = vsyncadd [#allocation4], 4294967040 }
  0x7a   :  { %288 = vsyncpa [#allocation3], 1 }
  0x7b   :  { %289 = vsyncpa [#allocation4], 1 }
  0x7c   :  { %290 = vsyncpa [#allocation5], 1 }

</bundles_post_ra>
